<compile_context>
chip_gen: v7x
topology: tpu7x:2x2x1
jax: 0.10.0
libtpu: 0.0.40
codegen_flags: <defaults>
</compile_context>

<pallas_src>
import jax
import jax.numpy as jnp
from jax.experimental import pallas as pl
from jax.experimental.pallas import tpu as pltpu


def mlp_kernel(x_ref,
               w1_ref, b1_ref,
               w2_ref, b2_ref,
               w3_ref, b3_ref,
               w4_ref, b4_ref,
               o_ref):
    # x_ref: [n_obs, TILE_B] bf16 (batch on lanes).  w{i}_ref: [out, in] bf16.
    # b{i}_ref: [out, 1] f32.  o_ref: [n_actions, TILE_B] f32.
    x = x_ref[...]

    # Layer 1: [32, n_obs] @ [n_obs, TB] -> [32, TB]
    h = jnp.dot(w1_ref[...], x, preferred_element_type=jnp.float32) + b1_ref[...]
    h = jnp.maximum(h, 0.0).astype(jnp.bfloat16)

    # Layer 2: [128, 32] @ [32, TB] -> [128, TB]
    h = jnp.dot(w2_ref[...], h, preferred_element_type=jnp.float32) + b2_ref[...]
    h = jnp.maximum(h, 0.0).astype(jnp.bfloat16)

    # Layer 3: [64, 128] @ [128, TB] -> [64, TB]
    h = jnp.dot(w3_ref[...], h, preferred_element_type=jnp.float32) + b3_ref[...]
    h = jnp.maximum(h, 0.0).astype(jnp.bfloat16)

    # Layer 4 (Q-head, no activation): [n_actions, 64] @ [64, TB] -> [n_actions, TB]
    out = jnp.dot(w4_ref[...], h, preferred_element_type=jnp.float32) + b4_ref[...]

    o_ref[...] = out.astype(o_ref.dtype)


def normal_network_forward(x, params, tile_b=256):
    """x: [B, n_obs] float32.  Returns Q-values [B, n_actions] float32."""
    B, n_obs = x.shape
    n_actions = params["w4t"].shape[0]

    # Batch tile: multiple of 128 lanes; don't over-pad tiny batches.
    tile_b = min(tile_b, 128 * pl.cdiv(B, 128))
    b_pad = tile_b * pl.cdiv(B, tile_b)

    # Lane-dense layout: batch on the minor axis.
    x_t = x.T.astype(jnp.bfloat16)                      # [n_obs, B]
    if b_pad != B:
        x_t = jnp.pad(x_t, ((0, 0), (0, b_pad - B)))

    grid = (b_pad // tile_b,)

    # Weights / biases: full-array blocks with constant index_map -> DMA'd
    # once, resident in VMEM across every batch tile.
    const = lambda i: (0, 0)
    in_specs = [
        pl.BlockSpec((n_obs, tile_b), lambda i: (0, i)),          # x tile
        pl.BlockSpec(params["w1t"].shape, const),
        pl.BlockSpec(params["b1"].shape, const),
        pl.BlockSpec(params["w2t"].shape, const),
        pl.BlockSpec(params["b2"].shape, const),
        pl.BlockSpec(params["w3t"].shape, const),
        pl.BlockSpec(params["b3"].shape, const),
        pl.BlockSpec(params["w4t"].shape, const),
        pl.BlockSpec(params["b4"].shape, const),
    ]

    out_t = pl.pallas_call(
        mlp_kernel,
        out_shape=jax.ShapeDtypeStruct((n_actions, b_pad), jnp.float32),
        grid_spec=pltpu.PrefetchScalarGridSpec(
            num_scalar_prefetch=0,
            grid=grid,
            in_specs=in_specs,
            out_specs=pl.BlockSpec((n_actions, tile_b), lambda i: (0, i)),
        ),
        compiler_params=pltpu.CompilerParams(
            dimension_semantics=("parallel",)),
    )(x_t,
      params["w1t"], params["b1"],
      params["w2t"], params["b2"],
      params["w3t"], params["b3"],
      params["w4t"], params["b4"])

    return out_t[:, :B].T                               # [B, n_actions] f32


def init_params(key, n_obs, n_actions):
    """Synthetic params matching torch nn.Linear default init.

    Weights stored as [out, in] (same as torch) in bf16; biases as [out, 1]
    in f32.  Forward math (y = W @ x + b on transposed activations) is
    identical to torch's x @ W.T + b.
    """
    dims = [n_obs, 32, 128, 64, n_actions]
    params = {}
    keys = jax.random.split(key, 8)
    for i in range(4):
        fan_in = dims[i]
        bound = 1.0 / jnp.sqrt(jnp.float32(fan_in))
        w = jax.random.uniform(keys[2 * i], (dims[i + 1], dims[i]),
                               jnp.float32, -bound, bound)
        b = jax.random.uniform(keys[2 * i + 1], (dims[i + 1], 1),
                               jnp.float32, -bound, bound)
        params[f"w{i + 1}t"] = w.astype(jnp.bfloat16)
        params[f"b{i + 1}"] = b
    return params


def reference_forward(x, params):
    """Pure-JAX reference replicating the kernel's bf16-in / f32-accumulate math."""
    h = x.T.astype(jnp.bfloat16)
    for i in range(1, 4):
        h = jnp.dot(params[f"w{i}t"], h,
                    preferred_element_type=jnp.float32) + params[f"b{i}"]
        h = jnp.maximum(h, 0.0).astype(jnp.bfloat16)
    out = jnp.dot(params["w4t"], h,
                  preferred_element_type=jnp.float32) + params["b4"]
    return out.T


if __name__ == "__main__":
    key = jax.random.PRNGKey(0)
    k_param, k_x = jax.random.split(key)

    n_obs = 4          # n_obs[0] in the torch module
    n_actions = 6
    batch = 512        # DQN replay-batch sized; two 256-row lane-dense tiles

    params = init_params(k_param, n_obs, n_actions)
    x = jax.random.normal(k_x, (batch, n_obs), jnp.float32)

    out = normal_network_forward(x, params)
    out = jax.block_until_ready(out)

    ref = reference_forward(x, params)
    assert out.shape == (batch, n_actions)
    assert jnp.allclose(out, ref, atol=1e-2, rtol=1e-2), "mismatch vs reference"

    print("KERNEL_OK")
</pallas_src>

<mosaic_0001>
module attributes {stable_mosaic.version = 11 : i64} {
  func.func @mlp_kernel(%arg0: i32, %arg1: memref<4x256xbf16, #tpu.memory_space<vmem>>, %arg2: memref<32x4xbf16, #tpu.memory_space<vmem>>, %arg3: memref<32x1xf32, #tpu.memory_space<vmem>>, %arg4: memref<128x32xbf16, #tpu.memory_space<vmem>>, %arg5: memref<128x1xf32, #tpu.memory_space<vmem>>, %arg6: memref<64x128xbf16, #tpu.memory_space<vmem>>, %arg7: memref<64x1xf32, #tpu.memory_space<vmem>>, %arg8: memref<6x64xbf16, #tpu.memory_space<vmem>>, %arg9: memref<6x1xf32, #tpu.memory_space<vmem>>, %arg10: memref<6x256xf32, #tpu.memory_space<vmem>>) attributes {dimension_semantics = [#tpu.dimension_semantics<parallel>], iteration_bounds = array<i64: 2>, scalar_prefetch = 0 : i64, scratch_operands = 0 : i64, tpu.core_type = #tpu.core_type<tc>, window_params = [{transform_indices = @transform_0, window_bounds = array<i64: 4, 256>}, {pipeline_mode = #tpu.pipeline_mode<synchronous>, transform_indices = @transform_1, window_bounds = array<i64: 32, 4>}, {pipeline_mode = #tpu.pipeline_mode<synchronous>, transform_indices = @transform_2, window_bounds = array<i64: 32, 1>}, {pipeline_mode = #tpu.pipeline_mode<synchronous>, transform_indices = @transform_3, window_bounds = array<i64: 128, 32>}, {pipeline_mode = #tpu.pipeline_mode<synchronous>, transform_indices = @transform_4, window_bounds = array<i64: 128, 1>}, {pipeline_mode = #tpu.pipeline_mode<synchronous>, transform_indices = @transform_5, window_bounds = array<i64: 64, 128>}, {pipeline_mode = #tpu.pipeline_mode<synchronous>, transform_indices = @transform_6, window_bounds = array<i64: 64, 1>}, {pipeline_mode = #tpu.pipeline_mode<synchronous>, transform_indices = @transform_7, window_bounds = array<i64: 6, 64>}, {pipeline_mode = #tpu.pipeline_mode<synchronous>, transform_indices = @transform_8, window_bounds = array<i64: 6, 1>}, {transform_indices = @transform_9, window_bounds = array<i64: 6, 256>}]} {
    %c0 = arith.constant 0 : index
    %c0_0 = arith.constant 0 : index
    %0 = vector.load %arg1[%c0, %c0_0] : memref<4x256xbf16, #tpu.memory_space<vmem>>, vector<4x256xbf16>
    %c0_1 = arith.constant 0 : index
    %c0_2 = arith.constant 0 : index
    %1 = vector.load %arg2[%c0_1, %c0_2] : memref<32x4xbf16, #tpu.memory_space<vmem>>, vector<32x4xbf16>
    %cst = arith.constant dense<0.000000e+00> : vector<32x256xf32>
    %2 = tpu.matmul %1, %0, %cst {dimension_numbers = #tpu.dot_dimension_numbers<[1], [0], [0], [1], [0, 0, 1, 1], [], []>} : vector<32x4xbf16>, vector<4x256xbf16>, vector<32x256xf32> -> vector<32x256xf32>
    %c0_3 = arith.constant 0 : index
    %c0_4 = arith.constant 0 : index
    %3 = vector.load %arg3[%c0_3, %c0_4] : memref<32x1xf32, #tpu.memory_space<vmem>>, vector<32x1xf32>
    %4 = vector.broadcast %3 : vector<32x1xf32> to vector<32x256xf32>
    %5 = arith.addf %2, %4 : vector<32x256xf32>
    %cst_5 = arith.constant 0.000000e+00 : f32
    %6 = vector.broadcast %cst_5 : f32 to vector<32x256xf32>
    %7 = arith.maximumf %5, %6 : vector<32x256xf32>
    %8 = arith.truncf %7 : vector<32x256xf32> to vector<32x256xbf16>
    %c0_6 = arith.constant 0 : index
    %c0_7 = arith.constant 0 : index
    %9 = vector.load %arg4[%c0_6, %c0_7] : memref<128x32xbf16, #tpu.memory_space<vmem>>, vector<128x32xbf16>
    %cst_8 = arith.constant dense<0.000000e+00> : vector<128x256xf32>
    %10 = tpu.matmul %9, %8, %cst_8 {dimension_numbers = #tpu.dot_dimension_numbers<[1], [0], [0], [1], [0, 0, 1, 1], [], []>} : vector<128x32xbf16>, vector<32x256xbf16>, vector<128x256xf32> -> vector<128x256xf32>
    %c0_9 = arith.constant 0 : index
    %c0_10 = arith.constant 0 : index
    %11 = vector.load %arg5[%c0_9, %c0_10] : memref<128x1xf32, #tpu.memory_space<vmem>>, vector<128x1xf32>
    %12 = vector.broadcast %11 : vector<128x1xf32> to vector<128x256xf32>
    %13 = arith.addf %10, %12 : vector<128x256xf32>
    %cst_11 = arith.constant 0.000000e+00 : f32
    %14 = vector.broadcast %cst_11 : f32 to vector<128x256xf32>
    %15 = arith.maximumf %13, %14 : vector<128x256xf32>
    %16 = arith.truncf %15 : vector<128x256xf32> to vector<128x256xbf16>
    %c0_12 = arith.constant 0 : index
    %c0_13 = arith.constant 0 : index
    %17 = vector.load %arg6[%c0_12, %c0_13] : memref<64x128xbf16, #tpu.memory_space<vmem>>, vector<64x128xbf16>
    %cst_14 = arith.constant dense<0.000000e+00> : vector<64x256xf32>
    %18 = tpu.matmul %17, %16, %cst_14 {dimension_numbers = #tpu.dot_dimension_numbers<[1], [0], [0], [1], [0, 0, 1, 1], [], []>} : vector<64x128xbf16>, vector<128x256xbf16>, vector<64x256xf32> -> vector<64x256xf32>
    %c0_15 = arith.constant 0 : index
    %c0_16 = arith.constant 0 : index
    %19 = vector.load %arg7[%c0_15, %c0_16] : memref<64x1xf32, #tpu.memory_space<vmem>>, vector<64x1xf32>
    %20 = vector.broadcast %19 : vector<64x1xf32> to vector<64x256xf32>
    %21 = arith.addf %18, %20 : vector<64x256xf32>
    %cst_17 = arith.constant 0.000000e+00 : f32
    %22 = vector.broadcast %cst_17 : f32 to vector<64x256xf32>
    %23 = arith.maximumf %21, %22 : vector<64x256xf32>
    %24 = arith.truncf %23 : vector<64x256xf32> to vector<64x256xbf16>
    %c0_18 = arith.constant 0 : index
    %c0_19 = arith.constant 0 : index
    %25 = vector.load %arg8[%c0_18, %c0_19] : memref<6x64xbf16, #tpu.memory_space<vmem>>, vector<6x64xbf16>
    %cst_20 = arith.constant dense<0.000000e+00> : vector<6x256xf32>
    %26 = tpu.matmul %25, %24, %cst_20 {dimension_numbers = #tpu.dot_dimension_numbers<[1], [0], [0], [1], [0, 0, 1, 1], [], []>} : vector<6x64xbf16>, vector<64x256xbf16>, vector<6x256xf32> -> vector<6x256xf32>
    %c0_21 = arith.constant 0 : index
    %c0_22 = arith.constant 0 : index
    %27 = vector.load %arg9[%c0_21, %c0_22] : memref<6x1xf32, #tpu.memory_space<vmem>>, vector<6x1xf32>
    %28 = vector.broadcast %27 : vector<6x1xf32> to vector<6x256xf32>
    %29 = arith.addf %26, %28 : vector<6x256xf32>
    %c0_23 = arith.constant 0 : index
    %c0_24 = arith.constant 0 : index
    %30 = vector.load %arg10[%c0_23, %c0_24] : memref<6x256xf32, #tpu.memory_space<vmem>>, vector<6x256xf32>
    tpu.vector_store %arg10[%c0_23, %c0_24], %29 {strides = array<i32>} : memref<6x256xf32, #tpu.memory_space<vmem>>, vector<6x256xf32>,
    return
  }
  func.func @transform_0(%arg0: i32) -> (i32, i32) {
    %c0_i32 = arith.constant 0 : i32
    %c0_i32_0 = arith.constant 0 : i32
    return %c0_i32, %arg0 : i32, i32
  }
  func.func @transform_1(%arg0: i32) -> (i32, i32) {
    %c0_i32 = arith.constant 0 : i32
    %c0_i32_0 = arith.constant 0 : i32
    %c0_i32_1 = arith.constant 0 : i32
    return %c0_i32, %c0_i32_0 : i32, i32
  }
  func.func @transform_2(%arg0: i32) -> (i32, i32) {
    %c0_i32 = arith.constant 0 : i32
    %c0_i32_0 = arith.constant 0 : i32
    %c0_i32_1 = arith.constant 0 : i32
    return %c0_i32, %c0_i32_0 : i32, i32
  }
  func.func @transform_3(%arg0: i32) -> (i32, i32) {
    %c0_i32 = arith.constant 0 : i32
    %c0_i32_0 = arith.constant 0 : i32
    %c0_i32_1 = arith.constant 0 : i32
    return %c0_i32, %c0_i32_0 : i32, i32
  }
  func.func @transform_4(%arg0: i32) -> (i32, i32) {
    %c0_i32 = arith.constant 0 : i32
    %c0_i32_0 = arith.constant 0 : i32
    %c0_i32_1 = arith.constant 0 : i32
    return %c0_i32, %c0_i32_0 : i32, i32
  }
  func.func @transform_5(%arg0: i32) -> (i32, i32) {
    %c0_i32 = arith.constant 0 : i32
    %c0_i32_0 = arith.constant 0 : i32
    %c0_i32_1 = arith.constant 0 : i32
    return %c0_i32, %c0_i32_0 : i32, i32
  }
  func.func @transform_6(%arg0: i32) -> (i32, i32) {
    %c0_i32 = arith.constant 0 : i32
    %c0_i32_0 = arith.constant 0 : i32
    %c0_i32_1 = arith.constant 0 : i32
    return %c0_i32, %c0_i32_0 : i32, i32
  }
  func.func @transform_7(%arg0: i32) -> (i32, i32) {
    %c0_i32 = arith.constant 0 : i32
    %c0_i32_0 = arith.constant 0 : i32
    %c0_i32_1 = arith.constant 0 : i32
    return %c0_i32, %c0_i32_0 : i32, i32
  }
  func.func @transform_8(%arg0: i32) -> (i32, i32) {
    %c0_i32 = arith.constant 0 : i32
    %c0_i32_0 = arith.constant 0 : i32
    %c0_i32_1 = arith.constant 0 : i32
    return %c0_i32, %c0_i32_0 : i32, i32
  }
  func.func @transform_9(%arg0: i32) -> (i32, i32) {
    %c0_i32 = arith.constant 0 : i32
    %c0_i32_0 = arith.constant 0 : i32
    return %c0_i32, %arg0 : i32, i32
  }
}

</mosaic_0001>

<bundles_post_ra>
// kernel: tpu_custom_call.1
= control target key start
LH: loop header
LB: loop body
LE: loop exit
PB: predicated region body
PF: predicated region fallthrough
CT: control target
= control target key end

     0   :  { %14 = vsyncpa [#allocation3], 0  ;;  %s1575_s0 = inlined_call_operand.vmem [shape: bf16[4,512], index: 0, kind: input, shape index: {}]   ;;  %s1576_s1 = inlined_call_operand.vmem [shape: bf16[32,4], index: 1, kind: input, shape index: {}]   ;;  %s1577_s2 = inlined_call_operand.vmem [shape: f32[32,1], index: 2, kind: input, shape index: {}]   ;;  %s1578_s3 = inlined_call_operand.vmem [shape: bf16[128,32], index: 3, kind: input, shape index: {}]   ;;  %s1579_s4 = inlined_call_operand.vmem [shape: f32[128,1], index: 4, kind: input, shape index: {}]   ;;  %s1580_s5 = inlined_call_operand.vmem [shape: bf16[64,128], index: 5, kind: input, shape index: {}]   ;;  %s1581_s6 = inlined_call_operand.vmem [shape: f32[64,1], index: 6, kind: input, shape index: {}]   ;;  %s1582_s7 = inlined_call_operand.vmem [shape: bf16[6,64], index: 7, kind: input, shape index: {}]   ;;  %s1583_s8 = inlined_call_operand.vmem [shape: f32[6,1], index: 8, kind: input, shape index: {}]   ;;  %s1584_s9 = inlined_call_operand.hbm [shape: f32[6,512], index: 9, kind: output, shape index: {}]  }
   0x1   :  { %16 = vsyncpa [#allocation3 + $0x1], 0  ;;  %s1317_s30 = smov 0   ;;  %s1319_s10 = smov 0  }
   0x2   :  { %s1321_s11 = smov 0   ;;  %s1323_s12 = smov 0  }
   0x3 LB: > { %s1338_s13 = sadd.s32 4294967295, %s1263_s12   ;;  %s1105_s14 = sadd.s32 4294967294, %s1263_s12   ;;  %s1263_s12 = sphi %s1323_s12, %s1590_s12   ;;  %s1259_s11 = sphi %s1321_s11, %s1589_s11   ;;  %s1255_s10 = sphi %s1319_s10, %s1588_s10   ;;  %s1251_s30 = sphi %s1317_s30, %s1587_s30  }
   0x4   : > { %s1342_s15 = sadd.s32 1, %s1263_s12   ;;  %s223_s16 = sadd.s32 1, %s1259_s11 }
   0x5   : > { %s220_s17 = ssub.s32 %s1263_s12, %s1342_s15  ;;  %p233_p0 = scmp.ne.s32.totalorder %s1259_s11, %s1255_s10 }
   0x6   : > { %p221_p1 = scmp.eq.s32.totalorder %s220_s17, 0  ;;  %p234_p2 = scmp.eq.s32.totalorder %s1338_s13, 1 }
   0x7   : > { %p239_p3 = scmp.ne.s32.totalorder %s1255_s10, %s1251_s30  ;;  %p240_p4 = scmp.eq.s32.totalorder %s1105_s14, 1 }
   0x8   : > { %s1353_s18 = scalar_select %p221_p1, %s1259_s11, %s223_s16  }
   0x9   : > { %p1355_p5 = por %p234_p2, %p233_p0  ;;  %p1359_p6 = por %p240_p4, %p239_p3 }
   0xa   : > { %p1108_p7 = scmp.ge.s32.totalorder %s1263_s12, 1  ;;  %p291_p8 = scmp.lt.s32.totalorder %s1263_s12, 3 }
   0xc   : > { %p292_p9 = pnand %p1108_p7, %p291_p8 }
   0xd   : > { %s1110_s21 = sshll.u32 (!%p292_p9), %s1338_s13, 1  ;;  %v1265_v0 = vmov (!%p292_p9), 0   ;;  %v340_v1 = vld [vmem:[%s1577_s2] sm:$0xff] (!%p292_p9)  ;;  %v342_v2 = vld [vmem:[%s1577_s2 + $0x10] sm:$0xff] (!%p292_p9)  ;;  %v341_v3 = vld [vmem:[%s1577_s2 + $0x8] sm:$0xff] (!%p292_p9)  ;;  %vm390_vm0 = vcmask (!%p292_p9), 1041408  }
   0xe   : > { %295 = sbr.rel (%p292_p9) target bundleno = 1023 (0x3ff), region = 56  ;;  %p328_p10 = scmp.lt.s32.totalorder (!%p292_p9), %s1110_s21, 3  ;;  %429 = vmatprep.mubr.bf16.mxu0 (!%p292_p9), %v1265_v0  ;;  %1185 = vset.pattern.permute.xlu0 (!%p292_p9), %v1265_v0  ;;  %v343_v4 = vld [vmem:[%s1577_s2 + $0x18] sm:$0xff] (!%p292_p9)  ;;  %v478_v8 = vld [vmem:[%s1579_s4] sm:$0xff] (!%p292_p9)  ;;  %v479_v9 = vld [vmem:[%s1579_s4 + $0x8] sm:$0xff] (!%p292_p9)  ;;  %vm383_vm1 = vcmask (!%p292_p9), 31744  }
   0xf   : > { %1186 = vset.pattern.permute.xlu1 (!%p292_p9), %v1265_v0  ;;  %671 = vmatprep.mubr.bf16.mxu1 (!%p292_p9), %v1265_v0  ;;  %v1187_v10 = vld [vmem:[%s1576_s1] sm:$0xff] (!%p292_p9)   ;;  %v480_v11 = vld [vmem:[%s1579_s4 + $0x10] sm:$0xff] (!%p292_p9)  ;;  %v481_v12 = vld [vmem:[%s1579_s4 + $0x18] sm:$0xff] (!%p292_p9)  ;;  %vm614_vm2 = vcmask (!%p292_p9), 261120   ;;  %vm984_vm3 = vcmask (!%p292_p9), 523264   ;;  %s324_s14 = sand.u32 (!%p292_p9), 1, %s1255_s10  }
  0x10   : > { %346 = vperm.xlu0 (!%p292_p9), %1185, %v340_v1   ;;  %356 = vperm.xlu1 (!%p292_p9), %1186, %v342_v2   ;;  %v482_v13 = vld [vmem:[%s1579_s4 + $0x20] sm:$0xff] (!%p292_p9)  ;;  %v483_v14 = vld [vmem:[%s1579_s4 + $0x28] sm:$0xff] (!%p292_p9)  ;;  %v484_v16 = vld [vmem:[%s1579_s4 + $0x30] sm:$0xff] (!%p292_p9)  ;;  %s1109_s16 = sshll.u32 (!%p292_p9), %s324_s14, 4  ;;  %s1144_s17 = sshll.u32 (!%p292_p9), %s1338_s13, 8 }
  0x11   : > { %v1188_v15 = vld [vmem:[%s1576_s1 + $0x8] sm:$0xff] (!%p292_p9)   ;;  %v485_v17 = vld [vmem:[%s1579_s4 + $0x38] sm:$0xff] (!%p292_p9)  ;;  %v486_v18 = vld [vmem:[%s1579_s4 + $0x40] sm:$0xff] (!%p292_p9)  ;;  %s1032_s13 = scalar_lea.sflag (!%p292_p9), [#allocation3], %s324_s14  ;;  %s1266_s27 = smov (!%p292_p9), [#allocation2]  }
  0x12   : > { %v487_v19 = vld [vmem:[%s1579_s4 + $0x48] sm:$0xff] (!%p292_p9)  ;;  %v488_v20 = vld [vmem:[%s1579_s4 + $0x50] sm:$0xff] (!%p292_p9)  ;;  %v489_v21 = vld [vmem:[%s1579_s4 + $0x58] sm:$0xff] (!%p292_p9) }
  0x13   : > { %v490_v22 = vld [vmem:[%s1579_s4 + $0x60] sm:$0xff] (!%p292_p9)  ;;  %v491_v23 = vld [vmem:[%s1579_s4 + $0x68] sm:$0xff] (!%p292_p9)  ;;  %v492_v24 = vld [vmem:[%s1579_s4 + $0x70] sm:$0xff] (!%p292_p9) }
  0x14   : > { %351 = vperm.xlu0 (!%p292_p9), %1185, %v341_v3   ;;  %361 = vperm.xlu1 (!%p292_p9), %1186, %v343_v4   ;;  %v493_v25 = vld [vmem:[%s1579_s4 + $0x78] sm:$0xff] (!%p292_p9)  ;;  %v808_v26 = vld [vmem:[%s1581_s6] sm:$0xff] (!%p292_p9)  ;;  %v809_v27 = vld [vmem:[%s1581_s6 + $0x8] sm:$0xff] (!%p292_p9) }
  0x15   : > { %s1592_s21 = smov (!%p328_p10, %s1110_s21), 3  ;;  %v810_v28 = vld [vmem:[%s1581_s6 + $0x10] sm:$0xff]  ;;  %v811_v29 = vld [vmem:[%s1581_s6 + $0x18] sm:$0xff]  ;;  %v812_v30 = vld [vmem:[%s1581_s6 + $0x20] sm:$0xff] }
  0x16   : > { %s1111_s28 = sshll.u32 %s1592_s21, 1  ;;  %v813_v31 = vld [vmem:[%s1581_s6 + $0x28] sm:$0xff]  ;;  %v814_v32 = vld [vmem:[%s1581_s6 + $0x30] sm:$0xff]  ;;  %v815_v33 = vld [vmem:[%s1581_s6 + $0x38] sm:$0xff]  ;;  %s1533_s21 = scalar_lea.hbm %s1584_s9, %s1144_s17 }
  0x17   : > { %s331_s22 = scalar_lea.vmem %s1575_s0, %s1111_s28  ;;  %v978_v34 = vld [vmem:[%s1583_s8] sm:$0x3f]  ;;  %s1205_s28 = sshll.u32 %s1266_s27, 4  ;;  %s1206_s28 = int_to_ptr.vmem [resolvable:$false] %s1205_s28 }
  0x18   : > { %v1114_v5 = vld.sshfl [vmem:[%s331_s22] sm:$0x33 pattern:$0x76325410]  ;;  %496 = vperm.xlu0 %1185, %v478_v8   ;;  %501 = vperm.xlu1 %1186, %v479_v9   ;;  %v1194_v9 = vld [vmem:[%s1578_s3 + $0x28] sm:$0xff]   ;;  %s326_s22 = scalar_lea.vmem [#allocation2], %s1109_s16 }
  0x19   : > { %v382_v6 = vcombine.high %v1114_v5, %v1114_v5  ;;  %v392_v7 = vsel %vm390_vm0, %v1114_v5, 0  ;;  %v1189_v4 = vld [vmem:[%s1578_s3] sm:$0xff]   ;;  %v1190_v5 = vld [vmem:[%s1578_s3 + $0x8] sm:$0xff]   ;;  %s1046_s23 = sshll.u32 %s326_s22, 4  ;;  %s1207_s29 = scalar_lea.vmem %s1206_s28, 512  ;;  %s1535_s23 = int_to_ptr.vmem [resolvable:$true] %s1046_s23 }
  0x1a   : > { %v1193_v8 = vld [vmem:[%s1578_s3 + $0x20] sm:$0xff]   ;;  %s1201_s26 = scalar_lea.vmem %s1535_s23, 256  ;;  %p1208_p0 = scmp.lt.s32.totalorder %s1535_s23, %s1206_s28 }
  0x1b   : > { %1115 = vmatprep.subr.msk.bf16.mxu0 %vm390_vm0, %v382_v6  ;;  %v1191_v6 = vld [vmem:[%s1578_s3 + $0x10] sm:$0xff]   ;;  %p1202_p11 = scmp.ne.s32.totalorder %s1535_s23, %s1201_s26  ;;  %p1209_p1 = scmp.lt.s32.totalorder %s1207_s29, %s1201_s26 }
  0x1c   : > { %398 = vmatpush1.bf16.msra.mxu0 %v392_v7  ;;  %506 = vperm.xlu0 %1185, %v480_v11   ;;  %v1192_v7 = vld [vmem:[%s1578_s3 + $0x18] sm:$0xff]  }
  0x1d   : > { %511 = vperm.xlu1 %1186, %v481_v12   ;;  %v1196_v11 = vld [vmem:[%s1578_s3 + $0x38] sm:$0xff]   ;;  %p1203_p12 = pnand %p1202_p11, %p1355_p5  ;;  %p1210_p2 = por %p1209_p1, %p1208_p0 }
  0x1f   : > { %1116 = vmatmul.mubr.msk.bf16.vlgmr.msra.gmra.mrb[0].mxu0 %vm383_vm1, %v1187_v10  ;;  %v1195_v10 = vld [vmem:[%s1578_s3 + $0x30] sm:$0xff]   ;;  %p1204_p13 = pneg %p1203_p12 }
  0x20   : > { %439 = vmatprep.mubr.bf16.mxu0 %v1265_v0  ;;  %516 = vperm.xlu0 %1185, %v482_v13  }
  0x21   : > { %521 = vperm.xlu1 %1186, %v483_v14   ;;  %p1211_p3 = pnand %p1210_p2, %p1204_p13 }
  0x24   : > { %526 = vperm.xlu0 %1185, %v484_v16  }
  0x25   : > { %531 = vperm.xlu1 %1186, %v485_v17  }
  0x27   : > { %1117 = vmatmul.mubr.msk.bf16.gmra.mrb[4].mxu0 %vm383_vm1, %v1188_v15 }
  0x28   : > { %912 = vmatprep.mubr.bf16.mxu0 %v1265_v0  ;;  %536 = vperm.xlu0 %1185, %v486_v18  }
  0x29   : > { %541 = vperm.xlu1 %1186, %v487_v19  }
  0x2c   : > { %546 = vperm.xlu0 %1185, %v488_v20  }
  0x2d   : > { %551 = vperm.xlu1 %1186, %v489_v21  }
  0x30   : > { %556 = vperm.xlu0 %1185, %v490_v22  }
  0x31   : > { %561 = vperm.xlu1 %1186, %v491_v23  }
  0x34   : > { %566 = vperm.xlu0 %1185, %v492_v24  }
  0x35   : > { %571 = vperm.xlu1 %1186, %v493_v25  }
  0x38   : > { %818 = vperm.xlu0 %1185, %v808_v26  }
  0x39   : > { %823 = vperm.xlu1 %1186, %v809_v27  }
  0x3c   : > { %828 = vperm.xlu0 %1185, %v810_v28  }
  0x3d   : > { %833 = vperm.xlu1 %1186, %v811_v29  }
  0x40   : > { %838 = vperm.xlu0 %1185, %v812_v30  }
  0x41   : > { %843 = vperm.xlu1 %1186, %v813_v31  }
  0x44   : > { %848 = vperm.xlu0 %1185, %v814_v32  }
  0x45   : > { %853 = vperm.xlu1 %1186, %v815_v33  }
  0x48   : > { %981 = vperm.xlu0 %1185, %v978_v34  }
  0x8f   : > { %v347_v35 = vpop.permute.xlu0 %346  ;;  %v357_v44 = vpop.permute.xlu1 %356 }
  0x93   : > { %v352_v39 = vpop.permute.xlu0 %351  ;;  %v362_v55 = vpop.permute.xlu1 %361 }
  0x97   : > { %v497_v12 = vpop.permute.xlu0 %496  ;;  %v502_v16 = vpop.permute.xlu1 %501 }
  0x9b   : > { %v507_v27 = vpop.permute.xlu0 %506 }
  0x9c   : > { %v512_v32 = vpop.permute.xlu1 %511 }
  0xf2   : > { %v431_v36 = vpop.f32.mrb[0].mxu0 }
  0xf3   : > { %v432_v37 = vadd.f32 %v431_v36, %v347_v35  ;;  %v433_v38 = vpop.f32.mrb[1].mxu0 }
  0xf4   : > { %v434_v40 = vadd.f32 %v433_v38, %v347_v35  ;;  %v435_v41 = vpop.f32.mrb[2].mxu0 }
  0xf5   : > { %v436_v42 = vadd.f32 %v435_v41, %v352_v39  ;;  %v437_v43 = vpop.f32.mrb[3].mxu0  ;;  %v450_v46 = vmax.f32 %v432_v37, 0.0 }
  0xf6   : > { %v438_v45 = vadd.f32 %v437_v43, %v352_v39  ;;  %v451_v48 = vmax.f32 %v434_v40, 0.0  ;;  %v517_v43 = vpop.permute.xlu0 %516 }
  0xf7   : > { %v452_v47 = vmax.f32 %v436_v42, 0.0 }
  0xf8   : > { %v453_v49 = vmax.f32 %v438_v45, 0.0 }
  0xf9   : > { %v458_v50 = vpack.c.bf16 %v452_v47, %v450_v46 }
  0xfa   : > { %v441_v51 = vpop.f32.mrb[4].mxu0  ;;  %v459_v52 = vpack.c.bf16 %v453_v49, %v451_v48  ;;  %v522_v48 = vpop.permute.xlu1 %521 }
  0xfb   : > { %v442_v53 = vadd.f32 %v441_v51, %v357_v44  ;;  %v443_v54 = vpop.f32.mrb[5].mxu0 }
  0xfc   : > { %v444_v56 = vadd.f32 %v443_v54, %v357_v44  ;;  %v445_v57 = vpop.f32.mrb[6].mxu0  ;;  %639 = vmatprep.subr.bf16.mxu1 %v459_v52 }
  0xfd   : > { %v446_v58 = vadd.f32 %v445_v57, %v362_v55  ;;  %v447_v59 = vpop.f32.mrb[7].mxu0  ;;  %640 = vmatpush1.bf16.msra.mxu1 %v458_v50  ;;  %v454_v61 = vmax.f32 %v442_v53, 0.0 }
  0xfe   : > { %v448_v60 = vadd.f32 %v447_v59, %v362_v55  ;;  %v455_v63 = vmax.f32 %v444_v56, 0.0  ;;  %v527_v59 = vpop.permute.xlu0 %526 }
  0xff   : > { %v456_v62 = vmax.f32 %v446_v58, 0.0 }
 0x100   : > { %v457_v1 = vmax.f32 %v448_v60, 0.0 }
 0x101   : > { %v460_v2 = vpack.c.bf16 %v456_v62, %v454_v61 }
 0x102   : > { %v461_v3 = vpack.c.bf16 %v457_v1, %v455_v63  ;;  %v532_v1 = vpop.permute.xlu1 %531 }
 0x104   : > { %641 = vmatprep.subr.bf16.mxu1 %v461_v3 }
 0x105   : > { %642 = vmatpush1.bf16.msra.mxu1 %v460_v2 }
 0x108   : > { %1126 = vmatmul.mubr.msk.bf16.vlgmr.msra.gmra.mrb[0].mxu1 %vm614_vm2, %v1189_v4 }
 0x109   : > { %681 = vmatprep.mubr.bf16.mxu1 %v1265_v0 }
 0x110   : > { %1127 = vmatmul.mubr.msk.bf16.gmra.mrb[4].mxu1 %vm614_vm2, %v1190_v5 }
 0x111   : > { %691 = vmatprep.mubr.bf16.mxu1 %v1265_v0 }
 0x118   : > { %1128 = vmatmul.mubr.msk.bf16.gmra.mrb[8].mxu1 %vm614_vm2, %v1191_v6 }
 0x119   : > { %701 = vmatprep.mubr.bf16.mxu1 %v1265_v0 }
 0x120   : > { %1129 = vmatmul.mubr.msk.bf16.gmra.mrb[12].mxu1 %vm614_vm2, %v1192_v7 }
 0x121   : > { %711 = vmatprep.mubr.bf16.mxu1 %v1265_v0 }
 0x128   : > { %1130 = vmatmul.mubr.msk.bf16.gmra.mrb[16].mxu1 %vm614_vm2, %v1193_v8 }
 0x129   : > { %721 = vmatprep.mubr.bf16.mxu1 %v1265_v0 }
 0x130   : > { %1131 = vmatmul.mubr.msk.bf16.gmra.mrb[20].mxu1 %vm614_vm2, %v1194_v9 }
 0x131   : > { %731 = vmatprep.mubr.bf16.mxu1 %v1265_v0 }
 0x138   : > { %1132 = vmatmul.mubr.msk.bf16.gmra.mrb[24].mxu1 %vm614_vm2, %v1195_v10 }
 0x139   : > { %741 = vmatprep.mubr.bf16.mxu1 %v1265_v0 }
 0x140   : > { %1133 = vmatmul.mubr.msk.bf16.gmra.mrb[28].mxu1 %vm614_vm2, %v1196_v11 }
 0x1db   : > { %v673_v13 = vpop.f32.mrb[0].mxu1 }
 0x1dc   : > { %v674_v14 = vadd.f32 %v673_v13, %v497_v12  ;;  %v675_v15 = vpop.f32.mrb[1].mxu1 }
 0x1dd   : > { %v676_v17 = vadd.f32 %v675_v15, %v497_v12  ;;  %v677_v18 = vpop.f32.mrb[2].mxu1  ;;  %v537_v12 = vpop.permute.xlu0 %536 }
 0x1de   : > { %v678_v19 = vadd.f32 %v677_v18, %v502_v16  ;;  %v679_v20 = vpop.f32.mrb[3].mxu1  ;;  %v752_v22 = vmax.f32 %v674_v14, 0.0 }
 0x1df   : > { %v680_v21 = vadd.f32 %v679_v20, %v502_v16  ;;  %v753_v24 = vmax.f32 %v676_v17, 0.0  ;;  %v542_v17 = vpop.permute.xlu1 %541 }
 0x1e0   : > { %v754_v23 = vmax.f32 %v678_v19, 0.0 }
 0x1e1   : > { %v755_v25 = vmax.f32 %v680_v21, 0.0 }
 0x1e2   : > { %v784_v26 = vpack.c.bf16 %v754_v23, %v752_v22 }
 0x1e3   : > { %v785_v28 = vpack.c.bf16 %v755_v25, %v753_v24  ;;  %v683_v29 = vpop.f32.mrb[4].mxu1 }
 0x1e4   : > { %v684_v30 = vadd.f32 %v683_v29, %v507_v27  ;;  %v685_v31 = vpop.f32.mrb[5].mxu1 }
 0x1e5   : > { %v686_v33 = vadd.f32 %v685_v31, %v507_v27  ;;  %v687_v34 = vpop.f32.mrb[6].mxu1  ;;  %880 = vmatprep.subr.bf16.mxu0 %v785_v28  ;;  %v547_v28 = vpop.permute.xlu0 %546 }
 0x1e6   : > { %v688_v35 = vadd.f32 %v687_v34, %v512_v32  ;;  %v689_v36 = vpop.f32.mrb[7].mxu1  ;;  %881 = vmatpush1.bf16.msra.mxu0 %v784_v26  ;;  %v756_v38 = vmax.f32 %v684_v30, 0.0 }
 0x1e7   : > { %v690_v37 = vadd.f32 %v689_v36, %v512_v32  ;;  %v757_v40 = vmax.f32 %v686_v33, 0.0  ;;  %v552_v33 = vpop.permute.xlu1 %551 }
 0x1e8   : > { %v758_v39 = vmax.f32 %v688_v35, 0.0 }
 0x1e9   : > { %v759_v41 = vmax.f32 %v690_v37, 0.0 }
 0x1ea   : > { %v786_v42 = vpack.c.bf16 %v758_v39, %v756_v38 }
 0x1eb   : > { %v787_v44 = vpack.c.bf16 %v759_v41, %v757_v40  ;;  %v693_v45 = vpop.f32.mrb[8].mxu1 }
 0x1ec   : > { %v694_v46 = vadd.f32 %v693_v45, %v517_v43  ;;  %v695_v47 = vpop.f32.mrb[9].mxu1 }
 0x1ed   : > { %v696_v49 = vadd.f32 %v695_v47, %v517_v43  ;;  %v697_v50 = vpop.f32.mrb[10].mxu1  ;;  %882 = vmatprep.subr.bf16.mxu0 %v787_v44  ;;  %v557_v44 = vpop.permute.xlu0 %556 }
 0x1ee   : > { %v698_v51 = vadd.f32 %v697_v50, %v522_v48  ;;  %v699_v52 = vpop.f32.mrb[11].mxu1  ;;  %883 = vmatpush1.bf16.msra.mxu0 %v786_v42  ;;  %v760_v54 = vmax.f32 %v694_v46, 0.0 }
 0x1ef   : > { %v700_v53 = vadd.f32 %v699_v52, %v522_v48  ;;  %v761_v56 = vmax.f32 %v696_v49, 0.0  ;;  %v562_v49 = vpop.permute.xlu1 %561 }
 0x1f0   : > { %v762_v55 = vmax.f32 %v698_v51, 0.0 }
 0x1f1   : > { %v763_v57 = vmax.f32 %v700_v53, 0.0 }
 0x1f2   : > { %v788_v58 = vpack.c.bf16 %v762_v55, %v760_v54 }
 0x1f3   : > { %v789_v60 = vpack.c.bf16 %v763_v57, %v761_v56  ;;  %v703_v61 = vpop.f32.mrb[12].mxu1 }
 0x1f4   : > { %v704_v62 = vadd.f32 %v703_v61, %v527_v59  ;;  %v705_v63 = vpop.f32.mrb[13].mxu1 }
 0x1f5   : > { %v706_v2 = vadd.f32 %v705_v63, %v527_v59  ;;  %v707_v3 = vpop.f32.mrb[14].mxu1  ;;  %884 = vmatprep.subr.bf16.mxu0 %v789_v60  ;;  %v567_v60 = vpop.permute.xlu0 %566 }
 0x1f6   : > { %v708_v4 = vadd.f32 %v707_v3, %v532_v1  ;;  %v709_v5 = vpop.f32.mrb[15].mxu1  ;;  %885 = vmatpush1.bf16.msra.mxu0 %v788_v58  ;;  %v764_v7 = vmax.f32 %v704_v62, 0.0 }
 0x1f7   : > { %v710_v6 = vadd.f32 %v709_v5, %v532_v1  ;;  %v765_v9 = vmax.f32 %v706_v2, 0.0  ;;  %v572_v2 = vpop.permute.xlu1 %571 }
 0x1f8   : > { %v766_v8 = vmax.f32 %v708_v4, 0.0 }
 0x1f9   : > { %v767_v10 = vmax.f32 %v710_v6, 0.0 }
 0x1fa   : > { %v790_v11 = vpack.c.bf16 %v766_v8, %v764_v7 }
 0x1fb   : > { %v791_v13 = vpack.c.bf16 %v767_v10, %v765_v9  ;;  %v713_v14 = vpop.f32.mrb[16].mxu1 }
 0x1fc   : > { %v714_v15 = vadd.f32 %v713_v14, %v537_v12  ;;  %v715_v16 = vpop.f32.mrb[17].mxu1  ;;  %v1197_v14 = vld [vmem:[%s1580_s5] sm:$0xff]  }
 0x1fd   : > { %v716_v18 = vadd.f32 %v715_v16, %v537_v12  ;;  %v717_v19 = vpop.f32.mrb[18].mxu1  ;;  %886 = vmatprep.subr.bf16.mxu0 %v791_v13  ;;  %v1199_v16 = vld [vmem:[%s1580_s5 + $0x10] sm:$0xff]  }
 0x1fe   : > { %v718_v20 = vadd.f32 %v717_v19, %v542_v17  ;;  %v719_v21 = vpop.f32.mrb[19].mxu1  ;;  %887 = vmatpush1.bf16.msra.mxu0 %v790_v11  ;;  %v768_v23 = vmax.f32 %v714_v15, 0.0  ;;  %v1198_v15 = vld [vmem:[%s1580_s5 + $0x8] sm:$0xff]  }
 0x1ff   : > { %v720_v22 = vadd.f32 %v719_v21, %v542_v17  ;;  %v769_v25 = vmax.f32 %v716_v18, 0.0  ;;  %v1200_v17 = vld [vmem:[%s1580_s5 + $0x18] sm:$0xff]   ;;  %v819_v18 = vpop.permute.xlu0 %818 }
 0x200   : > { %v770_v24 = vmax.f32 %v718_v20, 0.0 }
 0x201   : > { %v771_v26 = vmax.f32 %v720_v22, 0.0  ;;  %v824_v22 = vpop.permute.xlu1 %823 }
 0x202   : > { %v792_v27 = vpack.c.bf16 %v770_v24, %v768_v23 }
 0x203   : > { %v793_v29 = vpack.c.bf16 %v771_v26, %v769_v25  ;;  %v723_v30 = vpop.f32.mrb[20].mxu1 }
 0x204   : > { %v724_v31 = vadd.f32 %v723_v30, %v547_v28  ;;  %v725_v32 = vpop.f32.mrb[21].mxu1 }
 0x205   : > { %v726_v34 = vadd.f32 %v725_v32, %v547_v28  ;;  %v727_v35 = vpop.f32.mrb[22].mxu1  ;;  %888 = vmatprep.subr.bf16.mxu0 %v793_v29 }
 0x206   : > { %v728_v36 = vadd.f32 %v727_v35, %v552_v33  ;;  %v729_v37 = vpop.f32.mrb[23].mxu1  ;;  %889 = vmatpush1.bf16.msra.mxu0 %v792_v27  ;;  %v772_v39 = vmax.f32 %v724_v31, 0.0 }
 0x207   : > { %v730_v38 = vadd.f32 %v729_v37, %v552_v33  ;;  %v773_v41 = vmax.f32 %v726_v34, 0.0  ;;  %v829_v33 = vpop.permute.xlu0 %828  ;;  %v834_v37 = vpop.permute.xlu1 %833 }
 0x208   : > { %v774_v40 = vmax.f32 %v728_v36, 0.0 }
 0x209   : > { %v775_v42 = vmax.f32 %v730_v38, 0.0 }
 0x20a   : > { %v794_v43 = vpack.c.bf16 %v774_v40, %v772_v39 }
 0x20b   : > { %v795_v45 = vpack.c.bf16 %v775_v42, %v773_v41  ;;  %v733_v46 = vpop.f32.mrb[24].mxu1 }
 0x20c   : > { %v734_v47 = vadd.f32 %v733_v46, %v557_v44  ;;  %v735_v48 = vpop.f32.mrb[25].mxu1 }
 0x20d   : > { %v736_v50 = vadd.f32 %v735_v48, %v557_v44  ;;  %v737_v51 = vpop.f32.mrb[26].mxu1  ;;  %890 = vmatprep.subr.bf16.mxu0 %v795_v45  ;;  %v839_v48 = vpop.permute.xlu0 %838 }
 0x20e   : > { %v738_v52 = vadd.f32 %v737_v51, %v562_v49  ;;  %v739_v53 = vpop.f32.mrb[27].mxu1  ;;  %891 = vmatpush1.bf16.msra.mxu0 %v794_v43  ;;  %v776_v55 = vmax.f32 %v734_v47, 0.0 }
 0x20f   : > { %v740_v54 = vadd.f32 %v739_v53, %v562_v49  ;;  %v777_v57 = vmax.f32 %v736_v50, 0.0  ;;  %v844_v53 = vpop.permute.xlu1 %843 }
 0x210   : > { %v778_v56 = vmax.f32 %v738_v52, 0.0 }
 0x211   : > { %v779_v58 = vmax.f32 %v740_v54, 0.0 }
 0x212   : > { %v796_v59 = vpack.c.bf16 %v778_v56, %v776_v55 }
 0x213   : > { %v797_v61 = vpack.c.bf16 %v779_v58, %v777_v57  ;;  %v743_v62 = vpop.f32.mrb[28].mxu1 }
 0x214   : > { %v744_v63 = vadd.f32 %v743_v62, %v567_v60  ;;  %v745_v1 = vpop.f32.mrb[29].mxu1 }
 0x215   : > { %v746_v3 = vadd.f32 %v745_v1, %v567_v60  ;;  %v747_v4 = vpop.f32.mrb[30].mxu1  ;;  %892 = vmatprep.subr.bf16.mxu0 %v797_v61  ;;  %v849_v1 = vpop.permute.xlu0 %848 }
 0x216   : > { %v748_v5 = vadd.f32 %v747_v4, %v572_v2  ;;  %v749_v6 = vpop.f32.mrb[31].mxu1  ;;  %893 = vmatpush1.bf16.msra.mxu0 %v796_v59  ;;  %v780_v8 = vmax.f32 %v744_v63, 0.0 }
 0x217   : > { %v750_v7 = vadd.f32 %v749_v6, %v572_v2  ;;  %v781_v10 = vmax.f32 %v746_v3, 0.0  ;;  %v854_v6 = vpop.permute.xlu1 %853 }
 0x218   : > { %v782_v9 = vmax.f32 %v748_v5, 0.0 }
 0x219   : > { %v783_v11 = vmax.f32 %v750_v7, 0.0 }
 0x21a   : > { %v798_v12 = vpack.c.bf16 %v782_v9, %v780_v8 }
 0x21b   : > { %v799_v13 = vpack.c.bf16 %v783_v11, %v781_v10 }
 0x21d   : > { %894 = vmatprep.subr.bf16.mxu0 %v799_v13 }
 0x21e   : > { %895 = vmatpush1.bf16.msra.mxu0 %v798_v12 }
 0x221   : > { %913 = vmatmul.mubr.bf16.vlgmr.msra.gmra.mrb[8].mxu0 %v1197_v14 }
 0x222   : > { %922 = vmatprep.mubr.bf16.mxu0 %v1265_v0 }
 0x229   : > { %923 = vmatmul.mubr.bf16.gmra.mrb[12].mxu0 %v1198_v15 }
 0x22a   : > { %932 = vmatprep.mubr.bf16.mxu0 %v1265_v0 }
 0x231   : > { %933 = vmatmul.mubr.bf16.gmra.mrb[16].mxu0 %v1199_v16 }
 0x232   : > { %942 = vmatprep.mubr.bf16.mxu0 %v1265_v0 }
 0x239   : > { %943 = vmatmul.mubr.bf16.gmra.mrb[20].mxu0 %v1200_v17 }
 0x23a   : > { %1020 = vmatprep.mubr.bf16.mxu0 %v1265_v0 }
 0x2f4   : > { %v914_v19 = vpop.f32.mrb[8].mxu0 }
 0x2f5   : > { %v915_v20 = vadd.f32 %v914_v19, %v819_v18  ;;  %v916_v21 = vpop.f32.mrb[9].mxu0  ;;  %v982_v19 = vpop.permute.xlu0 %981 }
 0x2f6   : > { %v917_v23 = vadd.f32 %v916_v21, %v819_v18  ;;  %v918_v24 = vpop.f32.mrb[10].mxu0  ;;  %v977_v18 = vld [vmem:[%s1582_s7] sm:$0x7] }
 0x2f7   : > { %v919_v25 = vadd.f32 %v918_v24, %v824_v22  ;;  %v920_v26 = vpop.f32.mrb[11].mxu0  ;;  %v953_v28 = vmax.f32 %v915_v20, 0.0 }
 0x2f8   : > { %v921_v27 = vadd.f32 %v920_v26, %v824_v22  ;;  %v954_v30 = vmax.f32 %v917_v23, 0.0 }
 0x2f9   : > { %v955_v29 = vmax.f32 %v919_v25, 0.0 }
 0x2fa   : > { %v956_v31 = vmax.f32 %v921_v27, 0.0 }
 0x2fb   : > { %v969_v32 = vpack.c.bf16 %v955_v29, %v953_v28 }
 0x2fc   : > { %v970_v34 = vpack.c.bf16 %v956_v31, %v954_v30  ;;  %v924_v35 = vpop.f32.mrb[12].mxu0 }
 0x2fd   : > { %v925_v36 = vadd.f32 %v924_v35, %v829_v33  ;;  %v926_v0 = vpop.f32.mrb[13].mxu0 }
 0x2fe   : > { %v927_v38 = vadd.f32 %v926_v0, %v829_v33  ;;  %v928_v39 = vpop.f32.mrb[14].mxu0  ;;  %988 = vmatprep.subr.bf16.mxu0 %v970_v34 }
 0x2ff   : > { %v929_v40 = vadd.f32 %v928_v39, %v834_v37  ;;  %v930_v41 = vpop.f32.mrb[15].mxu0  ;;  %989 = vmatpush1.bf16.msra.mxu0 %v969_v32  ;;  %v957_v43 = vmax.f32 %v925_v36, 0.0 }
 0x300   : > { %v931_v42 = vadd.f32 %v930_v41, %v834_v37  ;;  %v958_v45 = vmax.f32 %v927_v38, 0.0 }
 0x301   : > { %v959_v44 = vmax.f32 %v929_v40, 0.0 }
 0x302   : > { %v960_v46 = vmax.f32 %v931_v42, 0.0 }
 0x303   : > { %v971_v47 = vpack.c.bf16 %v959_v44, %v957_v43 }
 0x304   : > { %v972_v49 = vpack.c.bf16 %v960_v46, %v958_v45  ;;  %v934_v50 = vpop.f32.mrb[16].mxu0 }
 0x305   : > { %v935_v51 = vadd.f32 %v934_v50, %v839_v48  ;;  %v936_v52 = vpop.f32.mrb[17].mxu0 }
 0x306   : > { %v937_v54 = vadd.f32 %v936_v52, %v839_v48  ;;  %v938_v55 = vpop.f32.mrb[18].mxu0  ;;  %990 = vmatprep.subr.bf16.mxu0 %v972_v49 }
 0x307   : > { %v939_v56 = vadd.f32 %v938_v55, %v844_v53  ;;  %v940_v57 = vpop.f32.mrb[19].mxu0  ;;  %991 = vmatpush1.bf16.msra.mxu0 %v971_v47  ;;  %v961_v59 = vmax.f32 %v935_v51, 0.0 }
 0x308   : > { %v941_v58 = vadd.f32 %v940_v57, %v844_v53  ;;  %v962_v61 = vmax.f32 %v937_v54, 0.0 }
 0x309   : > { %v963_v60 = vmax.f32 %v939_v56, 0.0 }
 0x30a   : > { %v964_v62 = vmax.f32 %v941_v58, 0.0 }
 0x30b   : > { %v973_v63 = vpack.c.bf16 %v963_v60, %v961_v59 }
 0x30c   : > { %v974_v2 = vpack.c.bf16 %v964_v62, %v962_v61  ;;  %v944_v3 = vpop.f32.mrb[20].mxu0 }
 0x30d   : > { %v945_v4 = vadd.f32 %v944_v3, %v849_v1  ;;  %v946_v5 = vpop.f32.mrb[21].mxu0 }
 0x30e   : > { %v947_v7 = vadd.f32 %v946_v5, %v849_v1  ;;  %v948_v8 = vpop.f32.mrb[22].mxu0  ;;  %992 = vmatprep.subr.bf16.mxu0 %v974_v2 }
 0x30f   : > { %v949_v9 = vadd.f32 %v948_v8, %v854_v6  ;;  %v950_v10 = vpop.f32.mrb[23].mxu0  ;;  %993 = vmatpush1.bf16.msra.mxu0 %v973_v63  ;;  %v965_v12 = vmax.f32 %v945_v4, 0.0 }
 0x310   : > { %v951_v11 = vadd.f32 %v950_v10, %v854_v6  ;;  %v966_v14 = vmax.f32 %v947_v7, 0.0 }
 0x311   : > { %v967_v13 = vmax.f32 %v949_v9, 0.0 }
 0x312   : > { %v968_v15 = vmax.f32 %v951_v11, 0.0 }
 0x313   : > { %v975_v16 = vpack.c.bf16 %v967_v13, %v965_v12 }
 0x314   : > { %v976_v17 = vpack.c.bf16 %v968_v15, %v966_v14 }
 0x316   : > { %994 = vmatprep.subr.bf16.mxu0 %v976_v17 }
 0x317   : > { %995 = vmatpush1.bf16.msra.mxu0 %v975_v16 }
 0x31a   : > { %1138 = vmatmul.mubr.msk.bf16.vlgmr.msra.gmra.mrb[24].mxu0 %vm984_vm3, %v977_v18 }
 0x3ed   : > { %v1022_v20 = vpop.f32.mrb[24].mxu0 }
 0x3ee   : > { %v1023_v21 = vadd.f32 %v1022_v20, %v982_v19  ;;  %v1024_v22 = vpop.f32.mrb[25].mxu0 }
 0x3ef   : > { %v1025_v23 = vadd.f32 %v1024_v22, %v982_v19  ;;  %v1026_v24 = vpop.f32.mrb[26].mxu0 }
 0x3f0   : > { %1029 = vst [vmem:[%s326_s22] sm:$0x3f] %v1023_v21  ;;  %v1027_v25 = vpop.f32.mrb[27].mxu0 }
 0x3f1   : > { %1030 = vst [vmem:[%s326_s22 + $0x8] sm:$0x3f] %v1025_v23 }
 0x3f2   : > { %1214 = shalt.err (!%p1211_p3)
}
 0x3f3   : > { %s1215_s14 = scalar_lea.hbm %s1533_s21, 256  ;;  %s1219_s22 = scalar_lea.hbm %s1584_s9, 512 }
 0x3f4   : > { %p1216_p4 = scmp.ne.s32.totalorder %s1533_s21, %s1215_s14  ;;  %p1220_p9 = scmp.lt.u32.totalorder %s1533_s21, %s1584_s9 }
 0x3f5   : > { %p1221_p10 = scmp.lt.u32.totalorder %s1219_s22, %s1215_s14  ;;  %p1223_p12 = scmp.lt.u32.totalorder %s1215_s14, %s1533_s21 }
 0x3f6   : > { %p1217_p7 = pnand %p1216_p4, %p1355_p5 }
 0x3f7   : > { %p1222_p11 = por %p1221_p10, %p1220_p9 }
 0x3f8   : > { %p1218_p8 = pneg %p1217_p7 }
 0x3f9   : > { %p1224_p13 = por %p1223_p12, %p1222_p11 }
 0x3fb   : > { %p1225_p0 = pnand %p1224_p13, %p1218_p8 }
 0x3fd   : > { %1228 = shalt.err (!%p1225_p0)
}
 0x3fe   : > { %1145 = dma.vmem_to_hbm [thread:$0]  (%p1355_p5), %s1535_s23, 256, %s1533_s21, %s1032_s13  }
 0x3ff PF: > { %p1151_p1 = scmp.ge.s32.totalorder %s1263_s12, 2  ;;  %s1058_s26 = sand.u32 1, %s1251_s30  }
 0x400   : > { %s1059_s27 = scalar_lea.sflag [#allocation3], %s1058_s26 }
 0x401   : > { %p1148_p2 = pnand %p1151_p1, %p1359_p6 }
 0x403   : > { %1246 = dma.done.wait (!%p1148_p2), %s1059_s27, 256  }
 0x404   : > { %1248 = vsyncadd (!%p1148_p2), %s1059_s27, 4294967040  ;;  %p19_p3 = scmp.ge.s32.totalorder %s1342_s15, 4   ;;  %s1587_s30 = smov %s1255_s10 }
 0x405   : > { %s1588_s10 = smov %s1259_s11  ;;  %s1589_s11 = smov %s1353_s18 }
 0x406   : > { %s1590_s12 = smov %s1342_s15  ;;  %21 = sbr.rel (!%p19_p3) target bundleno = 3 (0x3), region = 91 }
 0x40d   :  { %1064 = vsyncpa [#allocation3], 1 }
 0x40e   :  { %1066 = vsyncpa [#allocation3 + $0x1], 1 }

</bundles_post_ra>
